<compile_context>
chip_gen: v7x
topology: tpu7x:2x2x1
jax: 0.10.0
libtpu: 0.0.40
codegen_flags: <defaults>
</compile_context>

<pallas_src>
import math

import numpy as np

import jax
import jax.numpy as jnp
from jax.experimental import pallas as pl
from jax.experimental.pallas import tpu as pltpu


def _vmem_specs(n):
    return [pl.BlockSpec(memory_space=pltpu.MemorySpace.VMEM) for _ in range(n)]


# -----------------------------------------------------------------------------
# Kernel A (runs once per parameter set): 2-layer GCN drug memory bank.
# adj_norm @ W1 + b1 is a parameter-only product, folded at init time (h1pre).
# -----------------------------------------------------------------------------
def gcn_kernel(adj_ref, h1pre_ref, w2_ref, b2_ref, out_ref):
    h1 = jnp.maximum(h1pre_ref[...], 0.0)             # ReLU (dropout = identity, eval)
    s2 = jnp.dot(h1, w2_ref[...], preferred_element_type=jnp.float32)
    out_ref[...] = (jnp.dot(adj_ref[...], s2, preferred_element_type=jnp.float32)
                    + b2_ref[...]).astype(out_ref.dtype)


def compute_drug_memory(params):
    nm, E = params["gcn_w1"].shape
    return pl.pallas_call(
        gcn_kernel,
        out_shape=jax.ShapeDtypeStruct((nm, E), jnp.float32),
        in_specs=_vmem_specs(4),
        out_specs=pl.BlockSpec(memory_space=pltpu.MemorySpace.VMEM),
    )(params["adj_norm"], params["gcn_h1_pre"], params["gcn_w2"], params["gcn_b2"])


# -----------------------------------------------------------------------------
# Kernel B (per-batch hot path): merged GRUs + query + attention + output MLP.
#
# Grid: (B,) over patients, dimension_semantics=("parallel",).
# Scalar prefetch: lens (B,) int32 = true visit count per patient.
#
# Per-grid-step ref layouts (leading batch dim squeezed via block_shape=None):
#   x_ref   : (Tmax, 2E)   [proc | diag] visit-mean embeddings, zero-padded rows
#   hv_ref  : (Tmax, nm)   multi-hot meds per visit (last/padded rows masked out)
#   wih_ref : (2E, 6H)     block-diagonal, gate-concatenated input weights (r,z,n)
#   whh_ref : (2H, 6H)     block-diagonal, gate-concatenated hidden weights
#   bih_ref : (1, 6H), bhh_ref : (1, 6H)
#   qw_ref  : (2H, E)      query Linear(4E->E), un-split (pr rows are 2H=128 wide)
#   qb_ref  : (1, E)
#   dm_ref  : (nm, E)      precomputed GCN drug memory;  dmT_ref : (E, nm) transpose
#   o1w_ref : (3, E, 2E)   output Linear(3E->2E) split: [0]=query [1]=fact1 [2]=fact2
#   o1b_ref : (1, 2E)
#   o2w_ref : (2E, NP)     output Linear(2E->nm), lane-padded to NP (mult of 128)
#   o2b_ref : (1, NP)
#   out_ref : (1, NP)
#   pr_ref  : (Tmax, 2H)   VMEM scratch, per-step merged hidden states (128-lane rows)
# -----------------------------------------------------------------------------
def gamenet_fused_kernel(lens_ref, x_ref, hv_ref,
                         wih_ref, whh_ref, bih_ref, bhh_ref,
                         qw_ref, qb_ref, dm_ref, dmT_ref,
                         o1w_ref, o1b_ref, o2w_ref, o2b_ref,
                         out_ref, pr_ref):
    Tmax = x_ref.shape[0]
    H2 = whh_ref.shape[0]                     # merged hidden width = 2H = 4E (=128)
    Tlen = lens_ref[pl.program_id(0)]         # true number of visits for this patient

    # hoisted input projection: ONE (Tmax,2E)@(2E,6H) matmul for all gates/encoders
    gi = (jnp.dot(x_ref[...], wih_ref[...], preferred_element_type=jnp.float32)
          + bih_ref[...])                                          # (Tmax, 6H)

    # merged block-diagonal recurrence: one (1,2H)@(2H,6H) matmul per step.
    # Padded steps (t >= Tlen) freeze the state, so the final h is the last
    # real visit's hidden state.  Tmax is small & static -> Python unroll.
    # TODO(synk): switch to lax.fori_loop(..., unroll=True) for long Tmax.
    h = jnp.zeros((1, H2), jnp.float32)
    for t in range(Tmax):
        gh = (jnp.dot(h, whh_ref[...], preferred_element_type=jnp.float32)
              + bhh_ref[...])                                      # (1, 6H)
        gt = gi[t:t + 1, :]
        r = jax.nn.sigmoid(gt[:, 0:H2] + gh[:, 0:H2])
        z = jax.nn.sigmoid(gt[:, H2:2 * H2] + gh[:, H2:2 * H2])
        n = jnp.tanh(gt[:, 2 * H2:3 * H2] + r * gh[:, 2 * H2:3 * H2])
        h_new = (1.0 - z) * n + z * h
        keep = (t < Tlen).astype(jnp.float32)                      # freeze on padding
        h = h_new * keep + h * (1.0 - keep)
        pr_ref[t:t + 1, :] = h                                     # full 128-lane row

    # query = Sequential(ReLU, Linear(4E->E)); all steps in one (Tmax,128)@(128,E).
    # Because padded steps are frozen, the last row equals the last real query.
    queries = (jnp.dot(jnp.maximum(pr_ref[...], 0.0), qw_ref[...],
                       preferred_element_type=jnp.float32) + qb_ref[...])   # (Tmax, E)
    query = queries[Tmax - 1:Tmax, :]                                       # (1, E)

    # fact1: softmax(query @ dm.T) @ dm   (dm pre-transposed -> plain dot)
    s1 = jnp.dot(query, dmT_ref[...], preferred_element_type=jnp.float32)   # (1, nm)
    s1 = s1 - jnp.max(s1, axis=-1, keepdims=True)
    e1 = jnp.exp(s1)
    kw1 = e1 * pl.reciprocal(jnp.sum(e1, axis=-1, keepdims=True), approx=True)
    fact1 = jnp.dot(kw1, dm_ref[...], preferred_element_type=jnp.float32)   # (1, E)

    # fact2: softmax over real history visits (rows < Tlen-1) against multi-hot meds.
    contract_last = (((1,), (1,)), ((), ()))
    s2 = jax.lax.dot_general(query, queries, contract_last,
                             preferred_element_type=jnp.float32)            # (1, Tmax)
    tidx = jax.lax.broadcasted_iota(jnp.int32, (1, Tmax), 1)
    s2 = jnp.where(tidx < Tlen - 1, s2, -1e30)
    s2 = s2 - jnp.max(s2, axis=-1, keepdims=True)
    e2 = jnp.exp(s2)
    vw = e2 * pl.reciprocal(jnp.sum(e2, axis=-1, keepdims=True), approx=True)
    wv = jnp.dot(vw, hv_ref[...], preferred_element_type=jnp.float32)       # (1, nm)
    fact2_hist = jnp.dot(wv, dm_ref[...], preferred_element_type=jnp.float32)
    use_hist = (Tlen > 1).astype(jnp.float32)
    fact2 = fact2_hist * use_hist + fact1 * (1.0 - use_hist)

    # output = Sequential(ReLU, Linear(3E->2E), ReLU, Linear(2E->nm_pad)).
    # Linear(3E->2E) split along input rows -> no lane-concat of 32-wide vectors.
    hmid = (jnp.dot(jnp.maximum(query, 0.0), o1w_ref[0], preferred_element_type=jnp.float32)
            + jnp.dot(jnp.maximum(fact1, 0.0), o1w_ref[1], preferred_element_type=jnp.float32)
            + jnp.dot(jnp.maximum(fact2, 0.0), o1w_ref[2], preferred_element_type=jnp.float32)
            + o1b_ref[...])
    hmid = jnp.maximum(hmid, 0.0)
    out_ref[...] = (jnp.dot(hmid, o2w_ref[...], preferred_element_type=jnp.float32)
                    + o2b_ref[...]).astype(out_ref.dtype)


# -----------------------------------------------------------------------------
# Batched GAMENet forward (eval).  jit this; re-traces only per padded bucket.
# -----------------------------------------------------------------------------
def gamenet_forward_batch(params, dm, dm_T, p_idx, p_msk, d_idx, d_msk, hv, lens):
    B, Tmax, _ = p_idx.shape
    E = params["emb_p"].shape[1]
    H2 = params["whh_full"].shape[0]          # 2H = 4E
    G3 = params["whh_full"].shape[1]          # 6H
    nm = dm.shape[0]
    NP = params["o2_w_pad"].shape[1]

    # masked-mean visit embeddings: one vectorized gather per code type (dropout = id).
    pe = params["emb_p"][p_idx] * p_msk[..., None]
    de = params["emb_d"][d_idx] * d_msk[..., None]
    p_seq = pe.sum(axis=2) / jnp.maximum(p_msk.sum(axis=2, keepdims=True), 1.0)
    d_seq = de.sum(axis=2) / jnp.maximum(d_msk.sum(axis=2, keepdims=True), 1.0)
    x = jnp.concatenate([p_seq, d_seq], axis=-1)                     # (B, Tmax, 2E)

    def wspec(shape):
        nd = len(shape)
        return pl.BlockSpec(shape, lambda b, l: (0,) * nd)           # VMEM-resident weight

    grid_spec = pltpu.PrefetchScalarGridSpec(
        num_scalar_prefetch=1,
        grid=(B,),
        in_specs=[
            pl.BlockSpec((None, Tmax, 2 * E), lambda b, l: (b, 0, 0)),   # x
            pl.BlockSpec((None, Tmax, nm), lambda b, l: (b, 0, 0)),      # hv
            wspec((2 * E, G3)),        # wih_full
            wspec((H2, G3)),           # whh_full
            wspec((1, G3)),            # bih_full
            wspec((1, G3)),            # bhh_full
            wspec((H2, E)),            # q_w
            wspec((1, E)),             # q_b
            wspec((nm, E)),            # drug memory
            wspec((E, nm)),            # drug memory transposed
            wspec((3, E, 2 * E)),      # o1_w split
            wspec((1, 2 * E)),         # o1_b
            wspec((2 * E, NP)),        # o2_w padded
            wspec((1, NP)),            # o2_b padded
        ],
        out_specs=pl.BlockSpec((None, 1, NP), lambda b, l: (b, 0, 0)),
        scratch_shapes=[pltpu.VMEM((Tmax, H2), jnp.float32)],
    )

    out_pad = pl.pallas_call(
        gamenet_fused_kernel,
        out_shape=jax.ShapeDtypeStruct((B, 1, NP), jnp.float32),
        grid_spec=grid_spec,
        compiler_params=pltpu.CompilerParams(dimension_semantics=("parallel",)),
    )(lens, x, hv,
      params["wih_full"], params["whh_full"], params["bih_full"], params["bhh_full"],
      params["q_w"], params["q_b"], dm, dm_T,
      params["o1_w"], params["o1_b"], params["o2_w_pad"], params["o2_b_pad"])

    return out_pad[:, 0, :nm]


# -----------------------------------------------------------------------------
# Host-side glue: pad/mask ragged visit code lists into fixed-shape arrays.
# -----------------------------------------------------------------------------
def pack_batch(p_list, d_list, m_list, nm):
    B = len(p_list)
    Tmax = max(len(p) for p in p_list)
    Lp = max(max(len(v) for v in pt) for pt in p_list)
    Ld = max(max(len(v) for v in pt) for pt in d_list)

    p_idx = np.zeros((B, Tmax, Lp), np.int32)
    p_msk = np.zeros((B, Tmax, Lp), np.float32)
    d_idx = np.zeros((B, Tmax, Ld), np.int32)
    d_msk = np.zeros((B, Tmax, Ld), np.float32)
    hv = np.zeros((B, Tmax, nm), np.float32)
    lens = np.zeros((B,), np.int32)

    for b in range(B):
        T = len(p_list[b])
        lens[b] = T
        for t in range(T):
            cp = np.asarray(p_list[b][t])
            p_idx[b, t, :cp.size] = cp
            p_msk[b, t, :cp.size] = 1.0
            cd = np.asarray(d_list[b][t])
            d_idx[b, t, :cd.size] = cd
            d_msk[b, t, :cd.size] = 1.0
            cm = np.asarray(m_list[b][t])
            hv[b, t, cm] = 1.0          # rows >= T-1 are masked inside the kernel

    return (jnp.asarray(p_idx), jnp.asarray(p_msk), jnp.asarray(d_idx),
            jnp.asarray(d_msk), jnp.asarray(hv), jnp.asarray(lens))


# -----------------------------------------------------------------------------
# Deterministic parameter init (synthetic weights, PyTorch-style init ranges).
# Raw per-gate GRU weights are kept for the pure-JAX reference; the kernel uses
# the block-diagonal, gate-concatenated packed layouts built from them.
# -----------------------------------------------------------------------------
def init_params(key, vocab_size, emb_dim, ehr_adj):
    E = emb_dim
    H = 2 * E            # GRU hidden per encoder
    H2 = 2 * H           # merged hidden width (both encoders)
    nm = vocab_size[2]
    NP = ((nm + 127) // 128) * 128
    ks = jax.random.split(key, 20)

    def u(k, shape, s):
        return jax.random.uniform(k, shape, jnp.float32, minval=-s, maxval=s)

    sH = 1.0 / math.sqrt(H)
    sE = 1.0 / math.sqrt(E)
    s4E = 1.0 / math.sqrt(4 * E)
    s3E = 1.0 / math.sqrt(3 * E)
    s2E = 1.0 / math.sqrt(2 * E)

    # raw GRU gate weights; index = 3*g + gate, gate order (r, z, n); g=0 proc, g=1 diag
    gru_wih = u(ks[2], (6, E, H), sH)
    gru_whh = u(ks[3], (6, H, H), sH)
    gru_bih = u(ks[4], (6, 1, H), sH)
    gru_bhh = u(ks[5], (6, 1, H), sH)

    # block-diagonal, gate-concatenated packing for the merged recurrence
    wih_full = jnp.zeros((2 * E, 3 * H2), jnp.float32)
    whh_full = jnp.zeros((H2, 3 * H2), jnp.float32)
    bih_full = jnp.zeros((1, 3 * H2), jnp.float32)
    bhh_full = jnp.zeros((1, 3 * H2), jnp.float32)
    for g in range(2):
        for k in range(3):
            c0 = k * H2 + g * H
            wih_full = wih_full.at[g * E:(g + 1) * E, c0:c0 + H].set(gru_wih[3 * g + k])
            whh_full = whh_full.at[g * H:(g + 1) * H, c0:c0 + H].set(gru_whh[3 * g + k])
            bih_full = bih_full.at[0, c0:c0 + H].set(gru_bih[3 * g + k, 0])
            bhh_full = bhh_full.at[0, c0:c0 + H].set(gru_bhh[3 * g + k, 0])

    o2_w = u(ks[16], (2 * E, nm), s2E)
    o2_b = u(ks[17], (1, nm), s2E)

    params = dict(
        emb_p=u(ks[0], (vocab_size[0], E), 0.1),
        emb_d=u(ks[1], (vocab_size[1], E), 0.1),
        gru_wih=gru_wih, gru_whh=gru_whh, gru_bih=gru_bih, gru_bhh=gru_bhh,
        wih_full=wih_full, whh_full=whh_full, bih_full=bih_full, bhh_full=bhh_full,
        # query Linear(4E->E), full (2H, E)
        q_w=u(ks[6], (H2, E), s4E),
        q_b=u(ks[7], (1, E), s4E),
        gcn_w1=u(ks[8], (nm, E), sE),
        gcn_b1=u(ks[9], (1, E), sE),
        gcn_w2=u(ks[10], (E, E), sE),
        gcn_b2=u(ks[11], (1, E), sE),
        # output Linear(3E->2E) split along input rows: [0]=query, [1]=fact1, [2]=fact2
        o1_w=u(ks[12], (3, E, 2 * E), s3E),
        o1_b=u(ks[13], (1, 2 * E), s3E),
        # output Linear(2E->nm), lane-padded to a multiple of 128
        o2_w_pad=jnp.zeros((2 * E, NP), jnp.float32).at[:, :nm].set(o2_w),
        o2_b_pad=jnp.zeros((1, NP), jnp.float32).at[:, :nm].set(o2_b),
    )

    # GCN.normalize(adj + I): row-normalize
    adj = ehr_adj.astype(jnp.float32) + jnp.eye(nm, dtype=jnp.float32)
    rowsum = adj.sum(axis=1)
    r_inv = jnp.where(rowsum > 0, 1.0 / rowsum, 0.0)
    params["adj_norm"] = r_inv[:, None] * adj
    # parameter-only fold: adj_norm @ W1 + b1
    params["gcn_h1_pre"] = params["adj_norm"] @ params["gcn_w1"] + params["gcn_b1"]
    return params


# -----------------------------------------------------------------------------
# Pure-JAX per-patient reference (original GAMENet math) for correctness check.
# -----------------------------------------------------------------------------
def reference_forward(params, p, d, m):
    E = params["emb_p"].shape[1]
    H = 2 * E
    nm = params["adj_norm"].shape[0]
    T = len(p)

    p_seq = jnp.stack([jnp.mean(params["emb_p"][jnp.asarray(pi)], axis=0) for pi in p], axis=0)
    d_seq = jnp.stack([jnp.mean(params["emb_d"][jnp.asarray(di)], axis=0) for di in d], axis=0)

    def gru_ref(x, g):
        h = jnp.zeros((1, H), jnp.float32)
        outs = []
        for t in range(x.shape[0]):
            xt = x[t:t + 1]
            gi = [xt @ params["gru_wih"][3 * g + k] + params["gru_bih"][3 * g + k]
                  for k in range(3)]
            gh = [h @ params["gru_whh"][3 * g + k] + params["gru_bhh"][3 * g + k]
                  for k in range(3)]
            r = jax.nn.sigmoid(gi[0] + gh[0])
            z = jax.nn.sigmoid(gi[1] + gh[1])
            n = jnp.tanh(gi[2] + r * gh[2])
            h = (1.0 - z) * n + z * h
            outs.append(h)
        return jnp.concatenate(outs, axis=0)

    o1 = gru_ref(p_seq, 0)
    o2 = gru_ref(d_seq, 1)
    pr = jnp.concatenate([o1, o2], axis=-1)                       # (T, 4E)
    queries = jnp.maximum(pr, 0.0) @ params["q_w"] + params["q_b"]
    query = queries[-1:]

    adj = params["adj_norm"]
    h1 = jnp.maximum(adj @ params["gcn_w1"] + params["gcn_b1"], 0.0)
    dm = adj @ (h1 @ params["gcn_w2"]) + params["gcn_b2"]

    kw1 = jax.nn.softmax(query @ dm.T, axis=-1)
    fact1 = kw1 @ dm
    if T > 1:
        hk = queries[:-1]
        hv = jnp.zeros((T - 1, nm), jnp.float32)
        for idx in range(T - 1):
            hv = hv.at[idx, jnp.asarray(m[idx])].set(1.0)
        vw = jax.nn.softmax(query @ hk.T, axis=-1)
        fact2 = (vw @ hv) @ dm
    else:
        fact2 = fact1

    cat = jnp.concatenate([query, fact1, fact2], axis=-1)
    o1_w_full = jnp.concatenate([params["o1_w"][k] for k in range(3)], axis=0)
    hmid = jnp.maximum(jnp.maximum(cat, 0.0) @ o1_w_full + params["o1_b"], 0.0)
    out = hmid @ params["o2_w_pad"] + params["o2_b_pad"]
    return out[:, :nm]


if __name__ == "__main__":
    key = jax.random.PRNGKey(0)
    vocab_size = (40, 48, 64)   # (procedure vocab, diagnosis vocab, medication vocab nm)
    emb_dim = 32

    k_adj, k_params, k_codes = jax.random.split(key, 3)

    # synthetic symmetric EHR co-occurrence adjacency over medications
    a = (jax.random.uniform(k_adj, (vocab_size[2], vocab_size[2])) > 0.8).astype(jnp.float32)
    ehr_adj = jnp.maximum(a, a.T)

    params = init_params(k_params, vocab_size, emb_dim, ehr_adj)

    # drug memory is parameter-only: compute once (Pallas GCN kernel), cache + pre-transpose
    drug_memory = jax.block_until_ready(compute_drug_memory(params))
    drug_memory_T = jax.block_until_ready(drug_memory.T)

    # synthetic batch of patients with varying visit counts and codes per visit
    visit_counts = [3, 1, 4, 2]
    B = len(visit_counts)
    p_list, d_list, m_list = [], [], []
    kc = k_codes
    for b, T in enumerate(visit_counts):
        ps, ds, ms = [], [], []
        for t in range(T):
            kc, k1, k2, k3 = jax.random.split(kc, 4)
            ps.append(jax.random.randint(k1, (2 + (b + t) % 4,), 0, vocab_size[0]))
            ds.append(jax.random.randint(k2, (2 + (b + 2 * t) % 5,), 0, vocab_size[1]))
            ms.append(jax.random.randint(k3, (1 + (b + t) % 4,), 0, vocab_size[2]))
        p_list.append(ps)
        d_list.append(ds)
        m_list.append(ms)

    p_idx, p_msk, d_idx, d_msk, hv, lens = pack_batch(p_list, d_list, m_list, vocab_size[2])

    fwd = jax.jit(gamenet_forward_batch)
    out = fwd(params, drug_memory, drug_memory_T,
              p_idx, p_msk, d_idx, d_msk, hv, lens)
    out = jax.block_until_ready(out)

    assert out.shape == (B, vocab_size[2]), out.shape
    assert bool(jnp.all(jnp.isfinite(out)))
    for b in range(B):
        ref_b = reference_forward(params, p_list[b], d_list[b], m_list[b])
        assert bool(jnp.allclose(out[b:b + 1], ref_b, rtol=2e-2, atol=2e-2)), (b, out[b], ref_b)

    print("KERNEL_OK")
</pallas_src>

<mosaic_0001>
module attributes {stable_mosaic.version = 11 : i64} {
  func.func @gcn_kernel(%arg0: memref<64x64xf32, #tpu.memory_space<vmem>>, %arg1: memref<64x32xf32, #tpu.memory_space<vmem>>, %arg2: memref<32x32xf32, #tpu.memory_space<vmem>>, %arg3: memref<1x32xf32, #tpu.memory_space<vmem>>, %arg4: memref<64x32xf32, #tpu.memory_space<vmem>>) attributes {dimension_semantics = [], scalar_prefetch = 0 : i64, scratch_operands = 0 : i64, tpu.core_type = #tpu.core_type<tc>} {
    %c0 = arith.constant 0 : index
    %c0_0 = arith.constant 0 : index
    %0 = vector.load %arg1[%c0, %c0_0] : memref<64x32xf32, #tpu.memory_space<vmem>>, vector<64x32xf32>
    %cst = arith.constant 0.000000e+00 : f32
    %1 = vector.broadcast %cst : f32 to vector<64x32xf32>
    %2 = arith.maximumf %0, %1 : vector<64x32xf32>
    %c0_1 = arith.constant 0 : index
    %c0_2 = arith.constant 0 : index
    %3 = vector.load %arg2[%c0_1, %c0_2] : memref<32x32xf32, #tpu.memory_space<vmem>>, vector<32x32xf32>
    %cst_3 = arith.constant dense<0.000000e+00> : vector<64x32xf32>
    %4 = tpu.matmul %2, %3, %cst_3 {dimension_numbers = #tpu.dot_dimension_numbers<[1], [0], [0], [1], [0, 0, 1, 1], [], []>} : vector<64x32xf32>, vector<32x32xf32>, vector<64x32xf32> -> vector<64x32xf32>
    %c0_4 = arith.constant 0 : index
    %c0_5 = arith.constant 0 : index
    %5 = vector.load %arg0[%c0_4, %c0_5] : memref<64x64xf32, #tpu.memory_space<vmem>>, vector<64x64xf32>
    %cst_6 = arith.constant dense<0.000000e+00> : vector<64x32xf32>
    %6 = tpu.matmul %5, %4, %cst_6 {dimension_numbers = #tpu.dot_dimension_numbers<[1], [0], [0], [1], [0, 0, 1, 1], [], []>} : vector<64x64xf32>, vector<64x32xf32>, vector<64x32xf32> -> vector<64x32xf32>
    %c0_7 = arith.constant 0 : index
    %c0_8 = arith.constant 0 : index
    %7 = vector.load %arg3[%c0_7, %c0_8] : memref<1x32xf32, #tpu.memory_space<vmem>>, vector<1x32xf32>
    %8 = vector.broadcast %7 : vector<1x32xf32> to vector<64x32xf32>
    %9 = arith.addf %6, %8 : vector<64x32xf32>
    %c0_9 = arith.constant 0 : index
    %c0_10 = arith.constant 0 : index
    %10 = vector.load %arg4[%c0_9, %c0_10] : memref<64x32xf32, #tpu.memory_space<vmem>>, vector<64x32xf32>
    tpu.vector_store %arg4[%c0_9, %c0_10], %9 {strides = array<i32>} : memref<64x32xf32, #tpu.memory_space<vmem>>, vector<64x32xf32>,
    return
  }
}

</mosaic_0001>

<bundles_post_ra>
// kernel: tpu_custom_call.1
= control target key start
LH: loop header
LB: loop body
LE: loop exit
PB: predicated region body
PF: predicated region fallthrough
CT: control target
= control target key end

     0   :  { %vm37_vm0 = vcmask 261120   ;;  %vm182_vm1 = vcmask 523264   ;;  %s585_s2 = inlined_call_operand.vmem [shape: f32[32,32], index: 2, kind: input, shape index: {}]   ;;  %s586_s1 = inlined_call_operand.vmem [shape: f32[64,32], index: 1, kind: input, shape index: {}]   ;;  %s587_s0 = inlined_call_operand.vmem [shape: f32[64,64], index: 0, kind: input, shape index: {}]   ;;  %s588_s3 = inlined_call_operand.vmem [shape: f32[1,32], index: 3, kind: input, shape index: {}]   ;;  %s589_s4 = inlined_call_operand.vmem [shape: f32[64,32], index: 4, kind: output, shape index: {}]  }
   0x1   :  { %v33_v0 = vld [vmem:[%s585_s2] sm:$0xff]  ;;  %v34_v1 = vld [vmem:[%s585_s2 + $0x8] sm:$0xff]  ;;  %v35_v2 = vld [vmem:[%s585_s2 + $0x10] sm:$0xff] }
   0x2   :  { %v417_v3 = vpack.c.bf16 %v34_v1, %v33_v0  ;;  %v36_v4 = vld [vmem:[%s585_s2 + $0x18] sm:$0xff]  ;;  %v17_v5 = vld [vmem:[%s586_s1] sm:$0xff]  ;;  %v18_v8 = vld [vmem:[%s586_s1 + $0x8] sm:$0xff] }
   0x3   :  { %v421_v6 = vpack.c.bf16 %v36_v4, %v35_v2  ;;  %v25_v7 = vmax.f32 %v17_v5, 0.0  ;;  %v19_v9 = vld [vmem:[%s586_s1 + $0x10] sm:$0xff]  ;;  %v26_v10 = vmax.f32 %v18_v8, 0.0  ;;  %v20_v12 = vld [vmem:[%s586_s1 + $0x18] sm:$0xff]  ;;  %v21_v13 = vld [vmem:[%s586_s1 + $0x20] sm:$0xff] }
   0x4   :  { %418 = vmatprep.subr.bf16.mxu0 %v417_v3  ;;  %v27_v11 = vmax.f32 %v19_v9, 0.0  ;;  %v28_v14 = vmax.f32 %v20_v12, 0.0  ;;  %v29_v15 = vmax.f32 %v21_v13, 0.0  ;;  %v22_v16 = vld [vmem:[%s586_s1 + $0x28] sm:$0xff]  ;;  %v23_v17 = vld [vmem:[%s586_s1 + $0x30] sm:$0xff]  ;;  %v24_v20 = vld [vmem:[%s586_s1 + $0x38] sm:$0xff] }
   0x5   :  { %420 = vmatpush3.bf16.msra.mxu0 %v417_v3  ;;  %377 = vmatprep.mubr.msk.f32.mxu0 %vm37_vm0, %v25_v7  ;;  %v30_v18 = vmax.f32 %v22_v16, 0.0  ;;  %v31_v19 = vmax.f32 %v23_v17, 0.0  ;;  %v32_v21 = vmax.f32 %v24_v20, 0.0  ;;  %v169_v22 = vld [vmem:[%s587_s0 + $0x10] sm:$0xff]  ;;  %v167_v23 = vld [vmem:[%s587_s0] sm:$0xff]  ;;  %v170_v36 = vld [vmem:[%s587_s0 + $0x18] sm:$0xff] }
   0x6   :  { %422 = vmatprep.subr.bf16.mxu0 %v421_v6  ;;  %408 = vmatprep.mubr.msk.f32.mxu1 %vm182_vm1, %v169_v22  ;;  %v168_v37 = vld [vmem:[%s587_s0 + $0x8] sm:$0xff]  ;;  %v171_v38 = vld [vmem:[%s587_s0 + $0x20] sm:$0xff]  ;;  %v173_v40 = vld [vmem:[%s587_s0 + $0x30] sm:$0xff] }
   0x7   :  { %v172_v39 = vld [vmem:[%s587_s0 + $0x28] sm:$0xff]  ;;  %v174_v41 = vld [vmem:[%s587_s0 + $0x38] sm:$0xff]  ;;  %v332_v42 = vld [vmem:[%s588_s3] ss:$0 sm:$0xff] }
   0x9   :  { %424 = vmatpush3.bf16.msra.mxu0 %v421_v6 }
   0xc   :  { %378 = vmatmul.mubr.msk.f32.vlgmr.msra.gmra.mrb[0].mxu0 %vm37_vm0, %v26_v10 }
   0xd   :  { %380 = vmatprep.mubr.msk.f32.mxu0 %vm37_vm0, %v27_v11 }
  0x10   :  { %381 = vmatmul.mubr.msk.f32.gmra.mrb[2].mxu0 %vm37_vm0, %v28_v14 }
  0x11   :  { %383 = vmatprep.mubr.msk.f32.mxu0 %vm37_vm0, %v29_v15 }
  0x14   :  { %384 = vmatmul.mubr.msk.f32.gmra.mrb[4].mxu0 %vm37_vm0, %v30_v18 }
  0x15   :  { %386 = vmatprep.mubr.msk.f32.mxu0 %vm37_vm0, %v31_v19 }
  0x18   :  { %387 = vmatmul.mubr.msk.f32.gmra.mrb[6].mxu0 %vm37_vm0, %v32_v21 }
  0x19   :  { %405 = vmatprep.mubr.msk.f32.mxu0 %vm182_vm1, %v167_v23 }
  0xdf   :  { %v379_v24 = vpop.f32.mrb[0].mxu0 }
  0xe0   :  { %v128_v25 = vpop.f32.mrb[1].mxu0 }
  0xe1   :  { %v425_v26 = vpack.c.bf16 %v379_v24, %v128_v25 }
  0xe3   :  { %v382_v27 = vpop.f32.mrb[2].mxu0  ;;  %426 = vmatprep.subr.bf16.mxu0 %v425_v26  ;;  %441 = vmatprep.subr.bf16.mxu1 %v425_v26 }
  0xe4   :  { %v138_v28 = vpop.f32.mrb[3].mxu0  ;;  %428 = vmatpush3.bf16.msra.mxu0 %v425_v26  ;;  %445 = vmatpush3.bf16.msra.mxu1 %v425_v26 }
  0xe5   :  { %v429_v29 = vpack.c.bf16 %v382_v27, %v138_v28 }
  0xe7   :  { %v385_v30 = vpop.f32.mrb[4].mxu0  ;;  %430 = vmatprep.subr.bf16.mxu0 %v429_v29  ;;  %442 = vmatprep.subr.bf16.mxu1 %v429_v29 }
  0xe8   :  { %v148_v31 = vpop.f32.mrb[5].mxu0  ;;  %432 = vmatpush3.bf16.msra.mxu0 %v429_v29  ;;  %446 = vmatpush3.bf16.msra.mxu1 %v429_v29 }
  0xe9   :  { %v433_v32 = vpack.c.bf16 %v385_v30, %v148_v31 }
  0xeb   :  { %v388_v33 = vpop.f32.mrb[6].mxu0  ;;  %434 = vmatprep.subr.bf16.mxu0 %v433_v32  ;;  %443 = vmatprep.subr.bf16.mxu1 %v433_v32 }
  0xec   :  { %v158_v34 = vpop.f32.mrb[7].mxu0  ;;  %436 = vmatpush3.bf16.msra.mxu0 %v433_v32  ;;  %447 = vmatpush3.bf16.msra.mxu1 %v433_v32 }
  0xed   :  { %v437_v35 = vpack.c.bf16 %v388_v33, %v158_v34 }
  0xef   :  { %438 = vmatprep.subr.bf16.mxu0 %v437_v35  ;;  %444 = vmatprep.subr.bf16.mxu1 %v437_v35 }
  0xf0   :  { %440 = vmatpush3.bf16.msra.mxu0 %v437_v35  ;;  %448 = vmatpush3.bf16.msra.mxu1 %v437_v35 }
  0xf3   :  { %409 = vmatmul.mubr.msk.f32.vlgmr.msra.gmra.mrb[0].mxu1 %vm182_vm1, %v170_v36  ;;  %406 = vmatmul.mubr.msk.f32.vlgmr.msra.gmra.mrb[8].mxu0 %vm182_vm1, %v168_v37 }
  0xf4   :  { %411 = vmatprep.mubr.msk.f32.mxu1 %vm182_vm1, %v171_v38 }
  0xf7   :  { %412 = vmatmul.mubr.msk.f32.gmra.mrb[2].mxu1 %vm182_vm1, %v172_v39 }
  0xf8   :  { %414 = vmatprep.mubr.msk.f32.mxu1 %vm182_vm1, %v173_v40 }
  0xfb   :  { %415 = vmatmul.mubr.msk.f32.gmra.mrb[4].mxu1 %vm182_vm1, %v174_v41 }
 0x1c6   :  { %v410_v43 = vpop.f32.mrb[0].mxu1  ;;  %v407_v44 = vpop.f32.mrb[8].mxu0 }
 0x1c7   :  { %v289_v45 = vadd.f32 %v410_v43, %v332_v42  ;;  %v283_v46 = vpop.f32.mrb[1].mxu1  ;;  %v279_v47 = vadd.f32 %v407_v44, %v332_v42  ;;  %v273_v48 = vpop.f32.mrb[9].mxu0 }
 0x1c8   :  { %v284_v49 = vadd.f32 %v332_v42, %v283_v46  ;;  %v274_v50 = vadd.f32 %v332_v42, %v273_v48 }
 0x1c9   :  { %315 = vst.msk [vmem:[%s589_s4 + $0x18] sm:$0xff] %vm37_vm0, %v289_v45  ;;  %313 = vst.msk [vmem:[%s589_s4 + $0x8] sm:$0xff] %vm37_vm0, %v279_v47 }
 0x1ca   :  { %314 = vst.msk [vmem:[%s589_s4 + $0x10] sm:$0xff] %vm37_vm0, %v284_v49  ;;  %v413_v51 = vpop.f32.mrb[2].mxu1  ;;  %312 = vst.msk [vmem:[%s589_s4] sm:$0xff] %vm37_vm0, %v274_v50 }
 0x1cb   :  { %v299_v52 = vadd.f32 %v413_v51, %v332_v42  ;;  %v293_v53 = vpop.f32.mrb[3].mxu1 }
 0x1cc   :  { %v294_v54 = vadd.f32 %v332_v42, %v293_v53 }
 0x1cd   :  { %317 = vst.msk [vmem:[%s589_s4 + $0x28] sm:$0xff] %vm37_vm0, %v299_v52 }
 0x1ce   :  { %316 = vst.msk [vmem:[%s589_s4 + $0x20] sm:$0xff] %vm37_vm0, %v294_v54  ;;  %v416_v55 = vpop.f32.mrb[4].mxu1 }
 0x1cf   :  { %v309_v56 = vadd.f32 %v416_v55, %v332_v42  ;;  %v303_v57 = vpop.f32.mrb[5].mxu1 }
 0x1d0   :  { %v304_v58 = vadd.f32 %v332_v42, %v303_v57 }
 0x1d1   :  { %319 = vst.msk [vmem:[%s589_s4 + $0x38] sm:$0xff] %vm37_vm0, %v309_v56 }
 0x1d2   :  { %318 = vst.msk [vmem:[%s589_s4 + $0x30] sm:$0xff] %vm37_vm0, %v304_v58 }

</bundles_post_ra>
